<compile_context>
chip_gen: v5e
topology: v5e:2x2
jax: 0.10.0
libtpu: 0.0.40
codegen_flags: <defaults>
</compile_context>

<pallas_src>
from functools import partial

import jax
import jax.numpy as jnp
import numpy as np
from jax.experimental import pallas as pl
from jax.experimental.pallas import tpu as pltpu


def get_default_embedding_size(n: int) -> int:
    return min(round(1.6 * n ** 0.56), 100)


TIME_EMBEDDING_SIZES = {
    'month': (12, get_default_embedding_size(12)),
    'day': (31, get_default_embedding_size(31)),
    'hour': (24, get_default_embedding_size(24)),
    'minute': (60, get_default_embedding_size(60)),
    'second': (60, get_default_embedding_size(60)),
    'day_of_week': (7, get_default_embedding_size(7)),
    'day_of_year': (366, get_default_embedding_size(366)),
}

LANE = 128           # lane width; H and combined-vocab alignment
ROW_TILE = 2048      # rows per grid step (working set ~ a few MiB, VMEM-safe everywhere)


def _round_up(x: int, m: int) -> int:
    return (x + m - 1) // m * m


def _time_embed_kernel(idx_ref, table_ref, enc_ref, dec_ref, *,
                       fe, fd, enc_or, dec_or, enc_tiles, dec_tiles, fuse):
    """One row tile.

    idx_ref   [fe+fd, TN] int32  feature-major, pre-offset combined-vocab
                                 indices; -1 sentinel = "no hit".
    table_ref [Vpad, Hpad] f32   same block every step -> VMEM resident.
    enc_ref / dec_ref [TN, Hpad] f32
    """
    idx_t = idx_ref[...]                     # (fe+fd, tn)
    tn = idx_t.shape[1]
    vpad = table_ref.shape[0]
    table = table_ref[...]
    # Combined-vocab iota along sublanes; rows live on lanes.
    iota_v = jax.lax.broadcasted_iota(jnp.int32, (vpad, tn), 0)

    def multihot_t(lo, hi, use_or):
        # hot_t[v, r] = multiplicity of vocab id v among features [lo, hi) of row r.
        if use_or:
            # Distinct keys per stream -> disjoint vocab ranges -> OR == sum,
            # single bool->f32 cast.
            hit = idx_t[lo:lo + 1, :] == iota_v
            for f in range(lo + 1, hi):
                hit = jnp.logical_or(hit, idx_t[f:f + 1, :] == iota_v)
            return hit.astype(jnp.float32)
        # A key repeats within the stream: keep multiplicity -> float sum.
        acc = (idx_t[lo:lo + 1, :] == iota_v).astype(jnp.float32)
        for f in range(lo + 1, hi):
            acc = acc + (idx_t[f:f + 1, :] == iota_v).astype(jnp.float32)
        return acc

    # Contract the vocab axis (dim 0 of both operands): hot_t^T @ table on the MXU.
    tn_dims = (((0,), (0,)), ((), ()))

    if fuse:
        # Equal tile counts for both streams: one MXU dot, table pushed once.
        hot_t = jnp.concatenate([multihot_t(0, fe, enc_or),
                                 multihot_t(fe, fe + fd, dec_or)], axis=1)
        res = jax.lax.dot_general(hot_t, table, tn_dims,
                                  preferred_element_type=jnp.float32)
        enc_ref[...] = res[:tn]
        dec_ref[...] = res[tn:]
    else:
        pid = pl.program_id(0)

        @pl.when(pid < enc_tiles)
        def _():
            enc_ref[...] = jax.lax.dot_general(
                multihot_t(0, fe, enc_or), table, tn_dims,
                preferred_element_type=jnp.float32)

        @pl.when(pid < dec_tiles)
        def _():
            dec_ref[...] = jax.lax.dot_general(
                multihot_t(fe, fe + fd, dec_or), table, tn_dims,
                preferred_element_type=jnp.float32)


class TimeEmbedding:
    """JAX/Pallas port of the PyTorch TimeEmbedding module."""

    def __init__(self, hidden_size, encoder_cat=(), decoder_cat=(), *, key=None):
        self._hidden_size = hidden_size
        self._encoder_cat = list(encoder_cat)
        self._decoder_cat = list(decoder_cat)
        self._embedding_keys = [k for k in [*self._encoder_cat, *self._decoder_cat]
                                if k in TIME_EMBEDDING_SIZES]
        # dedupe preserving order (mirrors nn.ModuleDict keys)
        self._unique_keys = list(dict.fromkeys(self._embedding_keys))

        if key is None:
            key = jax.random.PRNGKey(0)
        # nn.Embedding default init: weight ~ N(0, 1)
        self.embeddings = {}
        for i, k in enumerate(self._unique_keys):
            vocab = TIME_EMBEDDING_SIZES[k][0]
            self.embeddings[k] = jax.random.normal(
                jax.random.fold_in(key, i), (vocab, hidden_size), jnp.float32)

        # Combined table shared by both streams; combined vocab padded only to
        # a lane multiple (128), hidden padded to a lane multiple as well.
        self._hpad = _round_up(max(hidden_size, 1), LANE)
        self._key_offset = {}
        off = 0
        for k in self._unique_keys:
            self._key_offset[k] = off
            off += TIME_EMBEDDING_SIZES[k][0]
        self._vpad = _round_up(max(off, 1), LANE)

        if self._unique_keys:
            tab = np.zeros((self._vpad, self._hpad), np.float32)
            for k in self._unique_keys:
                v = TIME_EMBEDDING_SIZES[k][0]
                tab[self._key_offset[k]:self._key_offset[k] + v, :hidden_size] = \
                    np.asarray(self.embeddings[k])
            self._table = jnp.asarray(tab)
        else:
            self._table = None

    # ---- helpers -----------------------------------------------------------

    def _stream_idx_t(self, cat, cat_names, npad):
        """Feature-major [F', npad] int32 pre-offset indices (-1 = no hit).

        Out-of-range user indices are mapped to the -1 sentinel so they
        contribute exactly zero (PyTorch nn.Embedding would raise on them).
        """
        b, s = cat.shape[0], cat.shape[1]
        n = b * s
        valid = [(i, k) for i, k in enumerate(cat_names) if k in self.embeddings]
        if not valid:
            return jnp.full((1, npad), -1, jnp.int32), True
        flat = cat.reshape(n, cat.shape[-1]).astype(jnp.int32)
        rows = []
        for i, k in valid:
            vocab = TIME_EMBEDDING_SIZES[k][0]
            col = flat[:, i]
            rows.append(jnp.where((col >= 0) & (col < vocab),
                                  col + self._key_offset[k], -1))
        idx_t = jnp.stack(rows, axis=0)                     # (F', n)
        if npad > n:
            idx_t = jnp.pad(idx_t, ((0, 0), (0, npad - n)), constant_values=-1)
        keys = [k for _, k in valid]
        return idx_t, len(set(keys)) == len(keys)

    # ---- forward ------------------------------------------------------------

    def __call__(self, encoder_cat, decoder_cat):
        h = self._hidden_size
        be, se = encoder_cat.shape[0], encoder_cat.shape[1]
        bd, sd = decoder_cat.shape[0], decoder_cat.shape[1]
        if not self._unique_keys:
            return (jnp.zeros((be, se, h), jnp.float32),
                    jnp.zeros((bd, sd, h), jnp.float32))

        n_enc, n_dec = be * se, bd * sd
        n_max = max(n_enc, n_dec, 1)
        tn = min(ROW_TILE, _round_up(n_max, LANE))
        enc_tiles = max(1, pl.cdiv(n_enc, tn))
        dec_tiles = max(1, pl.cdiv(n_dec, tn))
        total_tiles = max(enc_tiles, dec_tiles)
        npad = total_tiles * tn

        enc_idx, enc_or = self._stream_idx_t(encoder_cat, self._encoder_cat, npad)
        dec_idx, dec_or = self._stream_idx_t(decoder_cat, self._decoder_cat, npad)
        fe, fd = enc_idx.shape[0], dec_idx.shape[0]
        idx = jnp.concatenate([enc_idx, dec_idx], axis=0)   # (fe+fd, npad)

        kernel = partial(_time_embed_kernel, fe=fe, fd=fd,
                         enc_or=enc_or, dec_or=dec_or,
                         enc_tiles=enc_tiles, dec_tiles=dec_tiles,
                         fuse=(enc_tiles == dec_tiles))

        hpad = self._hpad
        enc_out, dec_out = pl.pallas_call(
            kernel,
            out_shape=(jax.ShapeDtypeStruct((npad, hpad), jnp.float32),
                       jax.ShapeDtypeStruct((npad, hpad), jnp.float32)),
            grid=(total_tiles,),
            in_specs=[
                pl.BlockSpec((fe + fd, tn), lambda i: (0, i)),       # row tile (feature-major)
                pl.BlockSpec((self._vpad, hpad), lambda i: (0, 0)),  # resident table
            ],
            out_specs=(pl.BlockSpec((tn, hpad), lambda i: (i, 0)),
                       pl.BlockSpec((tn, hpad), lambda i: (i, 0))),
            compiler_params=pltpu.CompilerParams(
                dimension_semantics=("parallel",),
                vmem_limit_bytes=32 * 1024 * 1024),
        )(idx, self._table)

        def crop(out, n_rows, b, s):
            # Skip the extra copy when the slice would be a no-op.
            if n_rows != npad or h != hpad:
                out = out[:n_rows, :h]
            return out.reshape(b, s, h)

        return crop(enc_out, n_enc, be, se), crop(dec_out, n_dec, bd, sd)


if __name__ == "__main__":
    key = jax.random.PRNGKey(0)
    B, S_ENC, S_DEC, H = 2, 8, 4, 32
    enc_keys = ["month", "hour", "day_of_week"]
    dec_keys = ["month", "minute"]

    model = TimeEmbedding(H, enc_keys, dec_keys, key=jax.random.fold_in(key, 123))

    def make_cat(names, seq, base):
        cols = []
        for i, name in enumerate(names):
            vocab = TIME_EMBEDDING_SIZES[name][0]
            cols.append(jax.random.randint(jax.random.fold_in(key, base + i),
                                           (B, seq, 1), 0, vocab, jnp.int32))
        return jnp.concatenate(cols, axis=-1)

    enc_cat = make_cat(enc_keys, S_ENC, 0)     # [2, 8, 3]
    dec_cat = make_cat(dec_keys, S_DEC, 100)   # [2, 4, 2]

    enc_out, dec_out = model(enc_cat, dec_cat)
    jax.block_until_ready((enc_out, dec_out))

    # Pure-JAX reference (same semantics as the PyTorch forward).
    def ref_stream(cat, names):
        b, s, _ = cat.shape
        out = jnp.zeros((b, s, H), jnp.float32)
        for i, name in enumerate(names):
            if name in model.embeddings:
                out = out + jnp.take(model.embeddings[name], cat[..., i], axis=0)
        return out

    np.testing.assert_allclose(np.asarray(enc_out),
                               np.asarray(ref_stream(enc_cat, enc_keys)),
                               rtol=1e-5, atol=1e-5)
    np.testing.assert_allclose(np.asarray(dec_out),
                               np.asarray(ref_stream(dec_cat, dec_keys)),
                               rtol=1e-5, atol=1e-5)
    assert enc_out.shape == (B, S_ENC, H) and dec_out.shape == (B, S_DEC, H)
    print("KERNEL_OK")
</pallas_src>

<mosaic_0001>
module attributes {stable_mosaic.version = 11 : i64} {
  func.func @_time_embed_kernel(%arg0: i32, %arg1: memref<5x128xi32, #tpu.memory_space<vmem>>, %arg2: memref<128x128xf32, #tpu.memory_space<vmem>>, %arg3: memref<128x128xf32, #tpu.memory_space<vmem>>, %arg4: memref<128x128xf32, #tpu.memory_space<vmem>>) attributes {dimension_semantics = [#tpu.dimension_semantics<parallel>], iteration_bounds = array<i64: 1>, scalar_prefetch = 0 : i64, scratch_operands = 0 : i64, tpu.core_type = #tpu.core_type<tc>, window_params = [{transform_indices = @transform_0, window_bounds = array<i64: 5, 128>}, {pipeline_mode = #tpu.pipeline_mode<synchronous>, transform_indices = @transform_1, window_bounds = array<i64: 128, 128>}, {transform_indices = @transform_2, window_bounds = array<i64: 128, 128>}, {transform_indices = @transform_3, window_bounds = array<i64: 128, 128>}]} {
    %c0 = arith.constant 0 : index
    %c0_0 = arith.constant 0 : index
    %0 = vector.load %arg1[%c0, %c0_0] : memref<5x128xi32, #tpu.memory_space<vmem>>, vector<5x128xi32>
    %c0_1 = arith.constant 0 : index
    %c0_2 = arith.constant 0 : index
    %1 = vector.load %arg2[%c0_1, %c0_2] : memref<128x128xf32, #tpu.memory_space<vmem>>, vector<128x128xf32>
    %2 = tpu.iota {dimensions = array<i32: 0>} : vector<128x128xi32>
    %3 = vector.extract_strided_slice %0 {offsets = [0, 0], sizes = [1, 128], strides = [1, 1]} : vector<5x128xi32> to vector<1x128xi32>
    %4 = vector.broadcast %3 : vector<1x128xi32> to vector<128x128xi32>
    %5 = arith.cmpi eq, %4, %2 : vector<128x128xi32>
    %6 = vector.extract_strided_slice %0 {offsets = [1, 0], sizes = [1, 128], strides = [1, 1]} : vector<5x128xi32> to vector<1x128xi32>
    %7 = vector.broadcast %6 : vector<1x128xi32> to vector<128x128xi32>
    %8 = arith.cmpi eq, %7, %2 : vector<128x128xi32>
    %9 = arith.ori %5, %8 : vector<128x128xi1>
    %10 = vector.extract_strided_slice %0 {offsets = [2, 0], sizes = [1, 128], strides = [1, 1]} : vector<5x128xi32> to vector<1x128xi32>
    %11 = vector.broadcast %10 : vector<1x128xi32> to vector<128x128xi32>
    %12 = arith.cmpi eq, %11, %2 : vector<128x128xi32>
    %13 = arith.ori %9, %12 : vector<128x128xi1>
    %14 = arith.extui %13 : vector<128x128xi1> to vector<128x128xi32>
    %15 = arith.sitofp %14 : vector<128x128xi32> to vector<128x128xf32>
    %16 = vector.extract_strided_slice %0 {offsets = [3, 0], sizes = [1, 128], strides = [1, 1]} : vector<5x128xi32> to vector<1x128xi32>
    %17 = vector.broadcast %16 : vector<1x128xi32> to vector<128x128xi32>
    %18 = arith.cmpi eq, %17, %2 : vector<128x128xi32>
    %19 = vector.extract_strided_slice %0 {offsets = [4, 0], sizes = [1, 128], strides = [1, 1]} : vector<5x128xi32> to vector<1x128xi32>
    %20 = vector.broadcast %19 : vector<1x128xi32> to vector<128x128xi32>
    %21 = arith.cmpi eq, %20, %2 : vector<128x128xi32>
    %22 = arith.ori %18, %21 : vector<128x128xi1>
    %23 = arith.extui %22 : vector<128x128xi1> to vector<128x128xi32>
    %24 = arith.sitofp %23 : vector<128x128xi32> to vector<128x128xf32>
    %25 = tpu.concatenate %15, %24 in 1 : vector<128x128xf32>, vector<128x128xf32> -> vector<128x256xf32>
    %cst = arith.constant dense<0.000000e+00> : vector<256x128xf32>
    %26 = tpu.matmul %25, %1, %cst {dimension_numbers = #tpu.dot_dimension_numbers<[0], [0], [1], [1], [0, 1, 1, 1], [], []>} : vector<128x256xf32>, vector<128x128xf32>, vector<256x128xf32> -> vector<256x128xf32>
    %27 = vector.extract_strided_slice %26 {offsets = [0, 0], sizes = [128, 128], strides = [1, 1]} : vector<256x128xf32> to vector<128x128xf32>
    %c0_3 = arith.constant 0 : index
    %c0_4 = arith.constant 0 : index
    %28 = vector.load %arg3[%c0_3, %c0_4] : memref<128x128xf32, #tpu.memory_space<vmem>>, vector<128x128xf32>
    tpu.vector_store %arg3[%c0_3, %c0_4], %27 {strides = array<i32>} : memref<128x128xf32, #tpu.memory_space<vmem>>, vector<128x128xf32>,
    %29 = vector.extract_strided_slice %26 {offsets = [128, 0], sizes = [128, 128], strides = [1, 1]} : vector<256x128xf32> to vector<128x128xf32>
    %c0_5 = arith.constant 0 : index
    %c0_6 = arith.constant 0 : index
    %30 = vector.load %arg4[%c0_5, %c0_6] : memref<128x128xf32, #tpu.memory_space<vmem>>, vector<128x128xf32>
    tpu.vector_store %arg4[%c0_5, %c0_6], %29 {strides = array<i32>} : memref<128x128xf32, #tpu.memory_space<vmem>>, vector<128x128xf32>,
    return
  }
  func.func @transform_0(%arg0: i32) -> (i32, i32) {
    %c0_i32 = arith.constant 0 : i32
    %c0_i32_0 = arith.constant 0 : i32
    return %c0_i32, %arg0 : i32, i32
  }
  func.func @transform_1(%arg0: i32) -> (i32, i32) {
    %c0_i32 = arith.constant 0 : i32
    %c0_i32_0 = arith.constant 0 : i32
    %c0_i32_1 = arith.constant 0 : i32
    return %c0_i32, %c0_i32_0 : i32, i32
  }
  func.func @transform_2(%arg0: i32) -> (i32, i32) {
    %c0_i32 = arith.constant 0 : i32
    %c0_i32_0 = arith.constant 0 : i32
    return %arg0, %c0_i32 : i32, i32
  }
  func.func @transform_3(%arg0: i32) -> (i32, i32) {
    %c0_i32 = arith.constant 0 : i32
    %c0_i32_0 = arith.constant 0 : i32
    return %arg0, %c0_i32 : i32, i32
  }
}

</mosaic_0001>

<bundles_post_ra>
// kernel: tpu_custom_call.1
= control target key start
LH: loop header
LB: loop body
LE: loop exit
PB: predicated region body
PF: predicated region fallthrough
CT: control target
= control target key end

     0   :  { %9 = vsyncpa [#allocation3], 0  ;;  %s1018_s0 = inlined_call_operand.hbm [shape: s32[5,128], index: 0, kind: input, shape index: {}]   ;;  %s1019_s1 = inlined_call_operand.hbm [shape: f32[128,128], index: 1, kind: input, shape index: {}]   ;;  %s1020_s2 = inlined_call_operand.hbm [shape: f32[128,128], index: 2, kind: output, shape index: {0}]   ;;  %s1021_s3 = inlined_call_operand.hbm [shape: f32[128,128], index: 3, kind: output, shape index: {1}]  }
   0x1   :  { %10 = vsyncpa [#allocation6], 0 }
   0x2   :  { %11 = vsyncpa [#allocation4], 0 }
   0x3   :  { %12 = vsyncpa [#allocation9], 0  ;;  %s18_s14 = sshll.u32 %s1018_s0, 4  ;;  %s826_s15 = smov [#allocation2]   ;;  %s19_s14 = int_to_ptr.hbm [resolvable:$true] %s18_s14 }
   0x4   :  { %s20_s16 = sshll.u32 %s826_s15, 4  ;;  %s28_s19 = sshll.u32 %s1019_s1, 4  ;;  %s21_s16 = int_to_ptr.vmem [resolvable:$true] %s20_s16  ;;  %s29_s19 = int_to_ptr.hbm [resolvable:$true] %s28_s19 }
   0x5   :  { %23 = dma.hbm_to_vmem [thread:$0]  %s19_s14, 128, %s21_s16, [#allocation3]  }
   0x6   :  { %s827_s20 = smov [#allocation5]   ;;  %s828_s22 = smov 128  }
   0x7   :  { %s30_s21 = sshll.u32 %s827_s20, 4  ;;  %s829_s23 = smov 8   ;;  %s31_s21 = int_to_ptr.vmem [resolvable:$true] %s30_s21 }
   0x8   :  { %36 = dma.hbm_to_vmem [thread:$0]  %s29_s19, 2048, %s31_s21, [#allocation6], %s828_s22, %s828_s22, %s829_s23  }
   0x9   :  { %818 = dma.done.wait [#allocation3], 128  }
   0xa   :  { %819 = vsyncadd [#allocation3], 4294967168 }
   0xb   :  { %820 = dma.done.wait [#allocation6], 2048  }
   0xc   :  { %821 = vsyncadd [#allocation6], 4294965248  ;;  %v62_v0 = vlaneseq  ;;  %v45_v2 = vld [vmem:[#allocation2] sm:$0x1f]  ;;  %v830_v10 = vmov 0.0   ;;  %v60_v59 = vld [vmem:[#allocation5 + $0x70] sm:$0xff] }
   0xd   :  { %v865_v4 = vperm.slane %v45_v2, 0  ;;  %v867_v5 = vperm.slane %v45_v2, 1  ;;  %v869_v6 = vperm.slane %v45_v2, 2  ;;  %v871_v7 = vperm.slane %v45_v2, 3  ;;  %v61_v58 = vld [vmem:[#allocation5 + $0x78] sm:$0xff]  ;;  %v59_v62 = vld [vmem:[#allocation5 + $0x68] sm:$0xff] }
   0xe   :  { %v862_v1 = vshrl.u32 %v62_v0, 7  ;;  %v873_v8 = vperm.slane %v45_v2, 4  ;;  %340 = vmatpush.msra.mxu0 %v61_v58  ;;  %556 = vmatpush.msra.mxu2 %v61_v58  ;;  %v58_v2 = vld [vmem:[#allocation5 + $0x60] sm:$0xff]  ;;  %s831_s0 = smov [#allocation7]   ;;  %s491_s26 = sshll.u32 %s1020_s2, 4  ;;  %s492_s26 = int_to_ptr.hbm [resolvable:$true] %s491_s26 }
   0xf   :  { %555 = vmatpush.msra.mxu1 %v61_v58  ;;  %557 = vmatpush.msra.mxu3 %v61_v58  ;;  %s489_s1 = sshll.u32 %s831_s0, 4  ;;  %s832_s27 = smov [#allocation8]   ;;  %s490_s1 = int_to_ptr.vmem [resolvable:$true] %s489_s1 }
  0x10   :  { %v64_v3 = vadd.s32 8, %v862_v1  ;;  %vm80_vm0 = vcmp.eq.s32.totalorder %v865_v4, %v862_v1  ;;  %vm97_vm1 = vcmp.eq.s32.totalorder %v867_v5, %v862_v1  ;;  %vm130_vm2 = vcmp.eq.s32.totalorder %v869_v6, %v862_v1  ;;  %341 = vmatpush.msra.mxu0 %v60_v59  ;;  %559 = vmatpush.msra.mxu2 %v60_v59  ;;  %s502_s28 = sshll.u32 %s832_s27, 4  ;;  %s504_s4 = sshll.u32 %s1021_s3, 4  ;;  %s503_s28 = int_to_ptr.vmem [resolvable:$true] %s502_s28  ;;  %s505_s4 = int_to_ptr.hbm [resolvable:$true] %s504_s4 }
  0x11   :  { %vm195_vm3 = vcmp.eq.s32.totalorder %v871_v7, %v862_v1  ;;  %vm113_vm4 = vmor %vm80_vm0, %vm97_vm1  ;;  %vm212_vm5 = vcmp.eq.s32.totalorder %v873_v8, %v862_v1  ;;  %v65_v9 = vadd.s32 16, %v862_v1  ;;  %v66_v16 = vadd.s32 24, %v862_v1  ;;  %558 = vmatpush.msra.mxu1 %v60_v59  ;;  %560 = vmatpush.msra.mxu3 %v60_v59 }
  0x12   :  { %vm81_vm6 = vcmp.eq.s32.totalorder %v865_v4, %v64_v3  ;;  %vm98_vm7 = vcmp.eq.s32.totalorder %v867_v5, %v64_v3  ;;  %vm146_vm8 = vmor %vm113_vm4, %vm130_vm2  ;;  %vm131_vm9 = vcmp.eq.s32.totalorder %v869_v6, %v64_v3  ;;  %vm196_vm11 = vcmp.eq.s32.totalorder %v871_v7, %v64_v3  ;;  %342 = vmatpush.msra.mxu0 %v59_v62 }
  0x13   :  { %v523_v11 = vsel %vm146_vm8, 1.0, %v830_v10  ;;  %vm228_vm10 = vmor %vm195_vm3, %vm212_vm5  ;;  %vm213_vm12 = vcmp.eq.s32.totalorder %v873_v8, %v64_v3  ;;  %vm82_vm0 = vcmp.eq.s32.totalorder %v865_v4, %v65_v9  ;;  %vm99_vm1 = vcmp.eq.s32.totalorder %v867_v5, %v65_v9  ;;  %562 = vmatpush.msra.mxu2 %v59_v62  ;;  %v57_v3 = vld [vmem:[#allocation5 + $0x58] sm:$0xff]  ;;  %561 = vmatpush.msra.mxu1 %v59_v62 }
  0x14   :  { %v539_v12 = vsel %vm228_vm10, 1.0, %v830_v10  ;;  %vm114_vm13 = vmor %vm81_vm6, %vm98_vm7  ;;  %vm132_vm3 = vcmp.eq.s32.totalorder %v869_v6, %v65_v9  ;;  %vm197_vm4 = vcmp.eq.s32.totalorder %v871_v7, %v65_v9  ;;  %vm214_vm5 = vcmp.eq.s32.totalorder %v873_v8, %v65_v9  ;;  %563 = vmatpush.msra.mxu3 %v59_v62  ;;  %343 = vmatpush.msra.mxu0 %v58_v2  ;;  %v56_v9 = vld [vmem:[#allocation5 + $0x50] sm:$0xff] }
  0x15   :  { %v610_v13 = vpack.i.bf16 %v523_v11, %v539_v12  ;;  %vm147_vm14 = vmor %vm114_vm13, %vm131_vm9  ;;  %vm83_vm8 = vcmp.eq.s32.totalorder %v865_v4, %v66_v16  ;;  %vm100_vm9 = vcmp.eq.s32.totalorder %v867_v5, %v66_v16  ;;  %vm215_vm13 = vcmp.eq.s32.totalorder %v873_v8, %v66_v16  ;;  %565 = vmatpush.msra.mxu2 %v58_v2 }
  0x16   :  { %vm229_vm15 = vmor %vm196_vm11, %vm213_vm12  ;;  %v524_v14 = vsel %vm147_vm14, 1.0, %v830_v10  ;;  %vm133_vm11 = vcmp.eq.s32.totalorder %v869_v6, %v66_v16  ;;  %vm198_vm12 = vcmp.eq.s32.totalorder %v871_v7, %v66_v16  ;;  %v67_v20 = vadd.s32 32, %v862_v1  ;;  %564 = vmatpush.msra.mxu1 %v58_v2  ;;  %344 = vmatpush.msra.mxu0 %v57_v3  ;;  %v54_v16 = vld [vmem:[#allocation5 + $0x40] sm:$0xff] }
  0x17   :  { %611 = vxpose.xlu0.b32.start [1/16] %v610_v13, 128  ;;  %v540_v15 = vsel %vm229_vm15, 1.0, %v830_v10  ;;  %vm115_vm2 = vmor %vm82_vm0, %vm99_vm1  ;;  %v68_v24 = vadd.s32 40, %v862_v1  ;;  %v69_v28 = vadd.s32 48, %v862_v1  ;;  %v70_v32 = vadd.s32 56, %v862_v1  ;;  %568 = vmatpush.msra.mxu2 %v57_v3  ;;  %v55_v13 = vld [vmem:[#allocation5 + $0x48] sm:$0xff] }
  0x18   :  { %v612_v17 = vpack.i.bf16 %v524_v14, %v540_v15  ;;  %vm148_vm6 = vmor %vm115_vm2, %vm132_vm3  ;;  %vm84_vm0 = vcmp.eq.s32.totalorder %v865_v4, %v67_v20  ;;  %vm101_vm1 = vcmp.eq.s32.totalorder %v867_v5, %v67_v20  ;;  %vm134_vm3 = vcmp.eq.s32.totalorder %v869_v6, %v67_v20  ;;  %566 = vmatpush.msra.mxu3 %v58_v2 }
  0x19   :  { %vm230_vm7 = vmor %vm197_vm4, %vm214_vm5  ;;  %v525_v18 = vsel %vm148_vm6, 1.0, %v830_v10  ;;  %vm199_vm4 = vcmp.eq.s32.totalorder %v871_v7, %v67_v20  ;;  %vm216_vm5 = vcmp.eq.s32.totalorder %v873_v8, %v67_v20  ;;  %v71_v36 = vadd.s32 64, %v862_v1  ;;  %567 = vmatpush.msra.mxu1 %v57_v3  ;;  %345 = vmatpush.msra.mxu0 %v56_v9  ;;  %v51_v20 = vld [vmem:[#allocation5 + $0x28] sm:$0xff] }
  0x1a   :  { %v541_v19 = vsel %vm230_vm7, 1.0, %v830_v10  ;;  %vm116_vm10 = vmor %vm83_vm8, %vm100_vm9  ;;  %vm85_vm8 = vcmp.eq.s32.totalorder %v865_v4, %v68_v24  ;;  %vm102_vm9 = vcmp.eq.s32.totalorder %v867_v5, %v68_v24  ;;  %v72_v40 = vadd.s32 72, %v862_v1  ;;  %571 = vmatpush.msra.mxu2 %v56_v9  ;;  %569 = vmatpush.msra.mxu3 %v57_v3 }
  0x1b   :  { %v614_v21 = vpack.i.bf16 %v525_v18, %v541_v19  ;;  %vm149_vm14 = vmor %vm116_vm10, %vm133_vm11  ;;  %vm135_vm11 = vcmp.eq.s32.totalorder %v869_v6, %v68_v24  ;;  %v73_v44 = vadd.s32 80, %v862_v1  ;;  %v74_v48 = vadd.s32 88, %v862_v1  ;;  %570 = vmatpush.msra.mxu1 %v56_v9  ;;  %346 = vmatpush.msra.mxu0 %v55_v13 }
  0x1c   :  { %vm231_vm15 = vmor %vm198_vm12, %vm215_vm13  ;;  %v526_v22 = vsel %vm149_vm14, 1.0, %v830_v10  ;;  %vm200_vm12 = vcmp.eq.s32.totalorder %v871_v7, %v68_v24  ;;  %vm217_vm13 = vcmp.eq.s32.totalorder %v873_v8, %v68_v24  ;;  %v75_v52 = vadd.s32 96, %v862_v1  ;;  %574 = vmatpush.msra.mxu2 %v55_v13  ;;  %572 = vmatpush.msra.mxu3 %v56_v9  ;;  %v46_v24 = vld [vmem:[#allocation5] sm:$0xff] }
  0x1d   :  { %v542_v23 = vsel %vm231_vm15, 1.0, %v830_v10  ;;  %vm117_vm2 = vmor %vm84_vm0, %vm101_vm1  ;;  %vm86_vm0 = vcmp.eq.s32.totalorder %v865_v4, %v69_v28  ;;  %vm103_vm1 = vcmp.eq.s32.totalorder %v867_v5, %v69_v28  ;;  %v76_v56 = vadd.s32 104, %v862_v1  ;;  %573 = vmatpush.msra.mxu1 %v55_v13  ;;  %347 = vmatpush.msra.mxu0 %v54_v16 }
  0x1e   :  { %v616_v25 = vpack.i.bf16 %v526_v22, %v542_v23  ;;  %vm150_vm6 = vmor %vm117_vm2, %vm134_vm3  ;;  %vm136_vm3 = vcmp.eq.s32.totalorder %v869_v6, %v69_v28  ;;  %v77_v63 = vadd.s32 112, %v862_v1  ;;  %v78_v14 = vadd.s32 120, %v862_v1  ;;  %577 = vmatpush.msra.mxu2 %v54_v16  ;;  %v52_v1 = vld [vmem:[#allocation5 + $0x30] sm:$0xff]  ;;  %575 = vmatpush.msra.mxu3 %v55_v13  ;;  %v47_v22 = vld [vmem:[#allocation5 + $0x8] sm:$0xff] }
  0x1f   :  { %613 = vxpose.xlu0.b32.cont [2/16] %v612_v17, 128  ;;  %vm232_vm7 = vmor %vm199_vm4, %vm216_vm5  ;;  %v527_v26 = vsel %vm150_vm6, 1.0, %v830_v10  ;;  %vm201_vm4 = vcmp.eq.s32.totalorder %v871_v7, %v69_v28  ;;  %vm218_vm5 = vcmp.eq.s32.totalorder %v873_v8, %v69_v28  ;;  %v53_v17 = vld [vmem:[#allocation5 + $0x38] sm:$0xff]  ;;  %576 = vmatpush.msra.mxu1 %v54_v16 }
  0x20   :  { %v543_v27 = vsel %vm232_vm7, 1.0, %v830_v10  ;;  %vm118_vm10 = vmor %vm85_vm8, %vm102_vm9  ;;  %vm87_vm8 = vcmp.eq.s32.totalorder %v865_v4, %v70_v32  ;;  %vm104_vm9 = vcmp.eq.s32.totalorder %v867_v5, %v70_v32  ;;  %348 = vmatpush.msra.mxu0 %v53_v17  ;;  %580 = vmatpush.msra.mxu2 %v53_v17 }
  0x21   :  { %v618_v29 = vpack.i.bf16 %v527_v26, %v543_v27  ;;  %vm151_vm14 = vmor %vm118_vm10, %vm135_vm11  ;;  %vm137_vm11 = vcmp.eq.s32.totalorder %v869_v6, %v70_v32  ;;  %578 = vmatpush.msra.mxu3 %v54_v16  ;;  %579 = vmatpush.msra.mxu1 %v53_v17 }
  0x22   :  { %vm233_vm15 = vmor %vm200_vm12, %vm217_vm13  ;;  %v528_v30 = vsel %vm151_vm14, 1.0, %v830_v10  ;;  %vm202_vm12 = vcmp.eq.s32.totalorder %v871_v7, %v70_v32  ;;  %vm219_vm13 = vcmp.eq.s32.totalorder %v873_v8, %v70_v32  ;;  %349 = vmatpush.msra.mxu0 %v52_v1  ;;  %583 = vmatpush.msra.mxu2 %v52_v1 }
  0x23   :  { %v544_v31 = vsel %vm233_vm15, 1.0, %v830_v10  ;;  %vm119_vm2 = vmor %vm86_vm0, %vm103_vm1  ;;  %vm88_vm0 = vcmp.eq.s32.totalorder %v865_v4, %v71_v36  ;;  %vm105_vm1 = vcmp.eq.s32.totalorder %v867_v5, %v71_v36  ;;  %581 = vmatpush.msra.mxu3 %v53_v17  ;;  %582 = vmatpush.msra.mxu1 %v52_v1 }
  0x24   :  { %v620_v33 = vpack.i.bf16 %v528_v30, %v544_v31  ;;  %vm152_vm6 = vmor %vm119_vm2, %vm136_vm3  ;;  %vm138_vm3 = vcmp.eq.s32.totalorder %v869_v6, %v71_v36  ;;  %350 = vmatpush.msra.mxu0 %v51_v20  ;;  %586 = vmatpush.msra.mxu2 %v51_v20 }
  0x25   :  { %vm234_vm7 = vmor %vm201_vm4, %vm218_vm5  ;;  %v529_v34 = vsel %vm152_vm6, 1.0, %v830_v10  ;;  %vm203_vm4 = vcmp.eq.s32.totalorder %v871_v7, %v71_v36  ;;  %vm220_vm5 = vcmp.eq.s32.totalorder %v873_v8, %v71_v36  ;;  %584 = vmatpush.msra.mxu3 %v52_v1  ;;  %585 = vmatpush.msra.mxu1 %v51_v20 }
  0x26   :  { %v545_v35 = vsel %vm234_vm7, 1.0, %v830_v10  ;;  %vm120_vm10 = vmor %vm87_vm8, %vm104_vm9  ;;  %vm89_vm8 = vcmp.eq.s32.totalorder %v865_v4, %v72_v40  ;;  %vm106_vm9 = vcmp.eq.s32.totalorder %v867_v5, %v72_v40 }
  0x27   :  { %615 = vxpose.xlu0.b32.cont [3/16] %v614_v21, 128  ;;  %v622_v37 = vpack.i.bf16 %v529_v34, %v545_v35  ;;  %vm153_vm14 = vmor %vm120_vm10, %vm137_vm11  ;;  %vm139_vm11 = vcmp.eq.s32.totalorder %v869_v6, %v72_v40  ;;  %v49_v21 = vld [vmem:[#allocation5 + $0x18] sm:$0xff]  ;;  %587 = vmatpush.msra.mxu3 %v51_v20 }
  0x28   :  { %vm235_vm15 = vmor %vm202_vm12, %vm219_vm13  ;;  %v530_v38 = vsel %vm153_vm14, 1.0, %v830_v10  ;;  %vm204_vm12 = vcmp.eq.s32.totalorder %v871_v7, %v72_v40  ;;  %vm221_vm13 = vcmp.eq.s32.totalorder %v873_v8, %v72_v40 }
  0x29   :  { %v546_v39 = vsel %vm235_vm15, 1.0, %v830_v10  ;;  %vm121_vm2 = vmor %vm88_vm0, %vm105_vm1  ;;  %vm90_vm0 = vcmp.eq.s32.totalorder %v865_v4, %v73_v44  ;;  %vm107_vm1 = vcmp.eq.s32.totalorder %v867_v5, %v73_v44 }
  0x2a   :  { %v624_v41 = vpack.i.bf16 %v530_v38, %v546_v39  ;;  %vm154_vm6 = vmor %vm121_vm2, %vm138_vm3  ;;  %vm140_vm3 = vcmp.eq.s32.totalorder %v869_v6, %v73_v44 }
  0x2b   :  { %vm236_vm7 = vmor %vm203_vm4, %vm220_vm5  ;;  %v531_v42 = vsel %vm154_vm6, 1.0, %v830_v10  ;;  %vm205_vm4 = vcmp.eq.s32.totalorder %v871_v7, %v73_v44  ;;  %vm222_vm5 = vcmp.eq.s32.totalorder %v873_v8, %v73_v44 }
  0x2c   :  { %v547_v43 = vsel %vm236_vm7, 1.0, %v830_v10  ;;  %vm122_vm10 = vmor %vm89_vm8, %vm106_vm9  ;;  %vm91_vm8 = vcmp.eq.s32.totalorder %v865_v4, %v74_v48  ;;  %vm108_vm9 = vcmp.eq.s32.totalorder %v867_v5, %v74_v48 }
  0x2d   :  { %v626_v45 = vpack.i.bf16 %v531_v42, %v547_v43  ;;  %vm155_vm14 = vmor %vm122_vm10, %vm139_vm11  ;;  %vm141_vm11 = vcmp.eq.s32.totalorder %v869_v6, %v74_v48 }
  0x2e   :  { %vm237_vm15 = vmor %vm204_vm12, %vm221_vm13  ;;  %v532_v46 = vsel %vm155_vm14, 1.0, %v830_v10  ;;  %vm206_vm12 = vcmp.eq.s32.totalorder %v871_v7, %v74_v48  ;;  %vm223_vm13 = vcmp.eq.s32.totalorder %v873_v8, %v74_v48 }
  0x2f   :  { %617 = vxpose.xlu0.b32.cont [4/16] %v616_v25, 128  ;;  %v548_v47 = vsel %vm237_vm15, 1.0, %v830_v10  ;;  %vm123_vm2 = vmor %vm90_vm0, %vm107_vm1  ;;  %vm92_vm0 = vcmp.eq.s32.totalorder %v865_v4, %v75_v52  ;;  %vm109_vm1 = vcmp.eq.s32.totalorder %v867_v5, %v75_v52 }
  0x30   :  { %v628_v49 = vpack.i.bf16 %v532_v46, %v548_v47  ;;  %vm156_vm6 = vmor %vm123_vm2, %vm140_vm3  ;;  %vm142_vm3 = vcmp.eq.s32.totalorder %v869_v6, %v75_v52 }
  0x31   :  { %vm238_vm7 = vmor %vm205_vm4, %vm222_vm5  ;;  %v533_v50 = vsel %vm156_vm6, 1.0, %v830_v10  ;;  %vm207_vm4 = vcmp.eq.s32.totalorder %v871_v7, %v75_v52  ;;  %vm224_vm5 = vcmp.eq.s32.totalorder %v873_v8, %v75_v52 }
  0x32   :  { %v549_v51 = vsel %vm238_vm7, 1.0, %v830_v10  ;;  %vm124_vm10 = vmor %vm91_vm8, %vm108_vm9  ;;  %vm93_vm8 = vcmp.eq.s32.totalorder %v865_v4, %v76_v56  ;;  %vm110_vm9 = vcmp.eq.s32.totalorder %v867_v5, %v76_v56 }
  0x33   :  { %v630_v53 = vpack.i.bf16 %v533_v50, %v549_v51  ;;  %vm157_vm14 = vmor %vm124_vm10, %vm141_vm11  ;;  %vm143_vm11 = vcmp.eq.s32.totalorder %v869_v6, %v76_v56 }
  0x34   :  { %vm239_vm15 = vmor %vm206_vm12, %vm223_vm13  ;;  %v534_v54 = vsel %vm157_vm14, 1.0, %v830_v10  ;;  %vm208_vm12 = vcmp.eq.s32.totalorder %v871_v7, %v76_v56  ;;  %vm225_vm13 = vcmp.eq.s32.totalorder %v873_v8, %v76_v56 }
  0x35   :  { %v550_v55 = vsel %vm239_vm15, 1.0, %v830_v10  ;;  %vm125_vm2 = vmor %vm92_vm0, %vm109_vm1  ;;  %vm94_vm0 = vcmp.eq.s32.totalorder %v865_v4, %v77_v63  ;;  %vm111_vm1 = vcmp.eq.s32.totalorder %v867_v5, %v77_v63 }
  0x36   :  { %v632_v57 = vpack.i.bf16 %v534_v54, %v550_v55  ;;  %vm158_vm6 = vmor %vm125_vm2, %vm142_vm3  ;;  %vm144_vm3 = vcmp.eq.s32.totalorder %v869_v6, %v77_v63 }
  0x37   :  { %619 = vxpose.xlu0.b32.cont [5/16] %v618_v29, 128  ;;  %vm240_vm7 = vmor %vm207_vm4, %vm224_vm5  ;;  %v535_v60 = vsel %vm158_vm6, 1.0, %v830_v10  ;;  %vm209_vm4 = vcmp.eq.s32.totalorder %v871_v7, %v77_v63  ;;  %vm226_vm5 = vcmp.eq.s32.totalorder %v873_v8, %v77_v63 }
  0x38   :  { %v551_v61 = vsel %vm240_vm7, 1.0, %v830_v10  ;;  %vm126_vm10 = vmor %vm93_vm8, %vm110_vm9  ;;  %vm95_vm8 = vcmp.eq.s32.totalorder %v865_v4, %v78_v14  ;;  %vm112_vm9 = vcmp.eq.s32.totalorder %v867_v5, %v78_v14  ;;  %v50_v5 = vld [vmem:[#allocation5 + $0x20] sm:$0xff] }
  0x39   :  { %v634_v0 = vpack.i.bf16 %v535_v60, %v551_v61  ;;  %vm159_vm14 = vmor %vm126_vm10, %vm143_vm11  ;;  %vm145_vm11 = vcmp.eq.s32.totalorder %v869_v6, %v78_v14  ;;  %351 = vmatpush.msra.mxu0 %v50_v5  ;;  %589 = vmatpush.msra.mxu2 %v50_v5  ;;  %v48_v6 = vld [vmem:[#allocation5 + $0x10] sm:$0xff] }
  0x3a   :  { %vm241_vm15 = vmor %vm208_vm12, %vm225_vm13  ;;  %v536_v11 = vsel %vm159_vm14, 1.0, %v830_v10  ;;  %vm210_vm12 = vcmp.eq.s32.totalorder %v871_v7, %v78_v14  ;;  %vm227_vm13 = vcmp.eq.s32.totalorder %v873_v8, %v78_v14  ;;  %588 = vmatpush.msra.mxu1 %v50_v5  ;;  %590 = vmatpush.msra.mxu3 %v50_v5 }
  0x3b   :  { %v552_v12 = vsel %vm241_vm15, 1.0, %v830_v10  ;;  %vm127_vm2 = vmor %vm94_vm0, %vm111_vm1  ;;  %352 = vmatpush.msra.mxu0 %v49_v21  ;;  %592 = vmatpush.msra.mxu2 %v49_v21 }
  0x3c   :  { %v636_v15 = vpack.i.bf16 %v536_v11, %v552_v12  ;;  %vm160_vm6 = vmor %vm127_vm2, %vm144_vm3  ;;  %591 = vmatpush.msra.mxu1 %v49_v21  ;;  %593 = vmatpush.msra.mxu3 %v49_v21 }
  0x3d   :  { %vm242_vm7 = vmor %vm209_vm4, %vm226_vm5  ;;  %v537_v18 = vsel %vm160_vm6, 1.0, %v830_v10  ;;  %353 = vmatpush.msra.mxu0 %v48_v6  ;;  %595 = vmatpush.msra.mxu2 %v48_v6 }
  0x3e   :  { %v553_v19 = vsel %vm242_vm7, 1.0, %v830_v10  ;;  %vm128_vm10 = vmor %vm95_vm8, %vm112_vm9  ;;  %594 = vmatpush.msra.mxu1 %v48_v6  ;;  %596 = vmatpush.msra.mxu3 %v48_v6 }
  0x3f   :  { %621 = vxpose.xlu0.b32.cont [6/16] %v620_v33, 128  ;;  %v638_v4 = vpack.i.bf16 %v537_v18, %v553_v19  ;;  %vm161_vm14 = vmor %vm128_vm10, %vm145_vm11  ;;  %354 = vmatpush.msra.mxu0 %v47_v22 }
  0x40   :  { %vm243_vm15 = vmor %vm210_vm12, %vm227_vm13  ;;  %v538_v7 = vsel %vm161_vm14, 1.0, %v830_v10  ;;  %598 = vmatpush.msra.mxu2 %v47_v22  ;;  %597 = vmatpush.msra.mxu1 %v47_v22 }
  0x41   :  { %v554_v8 = vsel %vm243_vm15, 1.0, %v830_v10  ;;  %599 = vmatpush.msra.mxu3 %v47_v22  ;;  %355 = vmatpush.msra.mxu0 %v46_v24 }
  0x42   :  { %v640_v23 = vpack.i.bf16 %v538_v7, %v554_v8  ;;  %601 = vmatpush.msra.mxu2 %v46_v24  ;;  %600 = vmatpush.msra.mxu1 %v46_v24 }
  0x43   :  { %602 = vmatpush.msra.mxu3 %v46_v24 }
  0x47   :  { %623 = vxpose.xlu0.b32.cont [7/16] %v622_v37, 128 }
  0x4f   :  { %625 = vxpose.xlu0.b32.cont [8/16] %v624_v41, 128 }
  0x57   :  { %627 = vxpose.xlu0.b32.cont [9/16] %v626_v45, 128 }
  0x5f   :  { %629 = vxpose.xlu0.b32.cont [10/16] %v628_v49, 128 }
  0x67   :  { %631 = vxpose.xlu0.b32.cont [11/16] %v630_v53, 128 }
  0x6f   :  { %633 = vxpose.xlu0.b32.cont [12/16] %v632_v57, 128 }
  0x77   :  { %635 = vxpose.xlu0.b32.cont [13/16] %v634_v0, 128 }
  0x7f   :  { %637 = vxpose.xlu0.b32.cont [14/16] %v636_v15, 128 }
  0x87   :  { %639 = vxpose.xlu0.b32.cont [15/16] %v638_v4, 128 }
  0x8f   :  { %641 = vxpose.xlu0.b32.end [16/16] %v640_v23, 128 }
  0xbb   :  { %v642_v10 = vpop.trf.xlu0 }
  0xbc   :  { %v646_v25 = vunpack.i.h.bf16 %v642_v10  ;;  %v643_v26 = vunpack.i.l.bf16 %v642_v10 }
  0xbe   :  { %356 = vmatmul.f32.vlgmr.msra.gmra.mxu0 %v646_v25  ;;  %404 = vmatmul.f32.vlgmr.msra.gmra.mxu2 %v643_v26 }
  0xc3   :  { %v647_v27 = vpop.trf.xlu0 }
  0xc4   :  { %v651_v28 = vunpack.i.h.bf16 %v647_v27  ;;  %v648_v29 = vunpack.i.l.bf16 %v647_v27 }
  0xc6   :  { %359 = vmatmul.f32.gmra.mxu0 %v651_v28  ;;  %407 = vmatmul.f32.gmra.mxu2 %v648_v29 }
  0xcb   :  { %v652_v30 = vpop.trf.xlu0 }
  0xcc   :  { %v656_v31 = vunpack.i.h.bf16 %v652_v30  ;;  %v653_v32 = vunpack.i.l.bf16 %v652_v30 }
  0xce   :  { %362 = vmatmul.f32.gmra.mxu0 %v656_v31  ;;  %410 = vmatmul.f32.gmra.mxu2 %v653_v32 }
  0xd3   :  { %v657_v33 = vpop.trf.xlu0 }
  0xd4   :  { %v661_v34 = vunpack.i.h.bf16 %v657_v33  ;;  %v658_v35 = vunpack.i.l.bf16 %v657_v33 }
  0xd6   :  { %365 = vmatmul.f32.gmra.mxu0 %v661_v34  ;;  %413 = vmatmul.f32.gmra.mxu2 %v658_v35 }
  0xdb   :  { %v662_v36 = vpop.trf.xlu0 }
  0xdc   :  { %v666_v37 = vunpack.i.h.bf16 %v662_v36  ;;  %v663_v38 = vunpack.i.l.bf16 %v662_v36 }
  0xde   :  { %368 = vmatmul.f32.gmra.mxu0 %v666_v37  ;;  %416 = vmatmul.f32.gmra.mxu2 %v663_v38 }
  0xe3   :  { %v667_v39 = vpop.trf.xlu0 }
  0xe4   :  { %v671_v40 = vunpack.i.h.bf16 %v667_v39  ;;  %v668_v41 = vunpack.i.l.bf16 %v667_v39 }
  0xe6   :  { %371 = vmatmul.f32.gmra.mxu0 %v671_v40  ;;  %419 = vmatmul.f32.gmra.mxu2 %v668_v41 }
  0xeb   :  { %v672_v42 = vpop.trf.xlu0 }
  0xec   :  { %v676_v43 = vunpack.i.h.bf16 %v672_v42  ;;  %v673_v44 = vunpack.i.l.bf16 %v672_v42 }
  0xee   :  { %374 = vmatmul.f32.gmra.mxu0 %v676_v43  ;;  %422 = vmatmul.f32.gmra.mxu2 %v673_v44 }
  0xf3   :  { %v677_v45 = vpop.trf.xlu0 }
  0xf4   :  { %v681_v46 = vunpack.i.h.bf16 %v677_v45  ;;  %v678_v47 = vunpack.i.l.bf16 %v677_v45 }
  0xf6   :  { %377 = vmatmul.f32.gmra.mxu0 %v681_v46  ;;  %425 = vmatmul.f32.gmra.mxu2 %v678_v47 }
  0xfb   :  { %v682_v48 = vpop.trf.xlu0 }
  0xfc   :  { %v686_v49 = vunpack.i.h.bf16 %v682_v48  ;;  %v683_v50 = vunpack.i.l.bf16 %v682_v48 }
  0xfe   :  { %380 = vmatmul.f32.vlgmr.msra.gmra.mxu1 %v686_v49  ;;  %428 = vmatmul.f32.vlgmr.msra.gmra.mxu3 %v683_v50 }
 0x103   :  { %v687_v51 = vpop.trf.xlu0 }
 0x104   :  { %v691_v52 = vunpack.i.h.bf16 %v687_v51  ;;  %v688_v53 = vunpack.i.l.bf16 %v687_v51 }
 0x106   :  { %383 = vmatmul.f32.gmra.mxu1 %v691_v52  ;;  %431 = vmatmul.f32.gmra.mxu3 %v688_v53 }
 0x10b   :  { %v692_v54 = vpop.trf.xlu0 }
 0x10c   :  { %v696_v55 = vunpack.i.h.bf16 %v692_v54  ;;  %v693_v56 = vunpack.i.l.bf16 %v692_v54 }
 0x10e   :  { %386 = vmatmul.f32.gmra.mxu1 %v696_v55  ;;  %434 = vmatmul.f32.gmra.mxu3 %v693_v56 }
 0x113   :  { %v697_v57 = vpop.trf.xlu0 }
 0x114   :  { %v701_v58 = vunpack.i.h.bf16 %v697_v57  ;;  %v698_v59 = vunpack.i.l.bf16 %v697_v57 }
 0x116   :  { %389 = vmatmul.f32.gmra.mxu1 %v701_v58  ;;  %437 = vmatmul.f32.gmra.mxu3 %v698_v59 }
 0x11b   :  { %v702_v60 = vpop.trf.xlu0 }
 0x11c   :  { %v706_v61 = vunpack.i.h.bf16 %v702_v60  ;;  %v703_v62 = vunpack.i.l.bf16 %v702_v60 }
 0x11e   :  { %392 = vmatmul.f32.gmra.mxu1 %v706_v61  ;;  %440 = vmatmul.f32.gmra.mxu3 %v703_v62 }
 0x123   :  { %v707_v63 = vpop.trf.xlu0 }
 0x124   :  { %v711_v0 = vunpack.i.h.bf16 %v707_v63  ;;  %v708_v2 = vunpack.i.l.bf16 %v707_v63 }
 0x126   :  { %395 = vmatmul.f32.gmra.mxu1 %v711_v0  ;;  %443 = vmatmul.f32.gmra.mxu3 %v708_v2 }
 0x12b   :  { %v712_v3 = vpop.trf.xlu0 }
 0x12c   :  { %v716_v9 = vunpack.i.h.bf16 %v712_v3  ;;  %v713_v11 = vunpack.i.l.bf16 %v712_v3 }
 0x12e   :  { %398 = vmatmul.f32.gmra.mxu1 %v716_v9  ;;  %446 = vmatmul.f32.gmra.mxu3 %v713_v11 }
 0x133   :  { %v717_v12 = vpop.trf.xlu0 }
 0x134   :  { %v721_v13 = vunpack.i.h.bf16 %v717_v12  ;;  %v718_v14 = vunpack.i.l.bf16 %v717_v12 }
 0x136   :  { %401 = vmatmul.f32.gmra.mxu1 %v721_v13  ;;  %449 = vmatmul.f32.gmra.mxu3 %v718_v14 }
 0x13b   :  { %v357_v15 = vpop.f32.mrf.mxu0 }
 0x13c   :  { %453 = vst [vmem:[#allocation7] sm:$0xff] %v357_v15 }
 0x141   :  { %v405_v16 = vpop.f32.mrf.mxu2 }
 0x142   :  { %469 = vst [vmem:[#allocation8] sm:$0xff] %v405_v16 }
 0x143   :  { %v360_v17 = vpop.f32.mrf.mxu0 }
 0x144   :  { %454 = vst [vmem:[#allocation7 + $0x8] sm:$0xff] %v360_v17 }
 0x149   :  { %v408_v1 = vpop.f32.mrf.mxu2 }
 0x14a   :  { %470 = vst [vmem:[#allocation8 + $0x8] sm:$0xff] %v408_v1 }
 0x14b   :  { %v363_v18 = vpop.f32.mrf.mxu0 }
 0x14c   :  { %455 = vst [vmem:[#allocation7 + $0x10] sm:$0xff] %v363_v18 }
 0x151   :  { %v411_v19 = vpop.f32.mrf.mxu2 }
 0x152   :  { %471 = vst [vmem:[#allocation8 + $0x10] sm:$0xff] %v411_v19 }
 0x153   :  { %v366_v20 = vpop.f32.mrf.mxu0 }
 0x154   :  { %456 = vst [vmem:[#allocation7 + $0x18] sm:$0xff] %v366_v20 }
 0x159   :  { %v414_v4 = vpop.f32.mrf.mxu2 }
 0x15a   :  { %472 = vst [vmem:[#allocation8 + $0x18] sm:$0xff] %v414_v4 }
 0x15b   :  { %v369_v5 = vpop.f32.mrf.mxu0 }
 0x15c   :  { %457 = vst [vmem:[#allocation7 + $0x20] sm:$0xff] %v369_v5 }
 0x161   :  { %v417_v21 = vpop.f32.mrf.mxu2 }
 0x162   :  { %473 = vst [vmem:[#allocation8 + $0x20] sm:$0xff] %v417_v21 }
 0x163   :  { %v372_v6 = vpop.f32.mrf.mxu0 }
 0x164   :  { %458 = vst [vmem:[#allocation7 + $0x28] sm:$0xff] %v372_v6 }
 0x169   :  { %v420_v7 = vpop.f32.mrf.mxu2 }
 0x16a   :  { %474 = vst [vmem:[#allocation8 + $0x28] sm:$0xff] %v420_v7 }
 0x16b   :  { %v375_v8 = vpop.f32.mrf.mxu0 }
 0x16c   :  { %459 = vst [vmem:[#allocation7 + $0x30] sm:$0xff] %v375_v8 }
 0x171   :  { %v423_v22 = vpop.f32.mrf.mxu2 }
 0x172   :  { %475 = vst [vmem:[#allocation8 + $0x30] sm:$0xff] %v423_v22 }
 0x173   :  { %v378_v23 = vpop.f32.mrf.mxu0 }
 0x174   :  { %460 = vst [vmem:[#allocation7 + $0x38] sm:$0xff] %v378_v23 }
 0x179   :  { %v426_v24 = vpop.f32.mrf.mxu2 }
 0x17a   :  { %476 = vst [vmem:[#allocation8 + $0x38] sm:$0xff] %v426_v24 }
 0x17b   :  { %v381_v10 = vpop.f32.mrf.mxu1 }
 0x17c   :  { %461 = vst [vmem:[#allocation7 + $0x40] sm:$0xff] %v381_v10 }
 0x181   :  { %v429_v25 = vpop.f32.mrf.mxu3 }
 0x182   :  { %477 = vst [vmem:[#allocation8 + $0x40] sm:$0xff] %v429_v25 }
 0x183   :  { %v384_v26 = vpop.f32.mrf.mxu1 }
 0x184   :  { %462 = vst [vmem:[#allocation7 + $0x48] sm:$0xff] %v384_v26 }
 0x189   :  { %v432_v27 = vpop.f32.mrf.mxu3 }
 0x18a   :  { %478 = vst [vmem:[#allocation8 + $0x48] sm:$0xff] %v432_v27 }
 0x18b   :  { %v387_v28 = vpop.f32.mrf.mxu1 }
 0x18c   :  { %463 = vst [vmem:[#allocation7 + $0x50] sm:$0xff] %v387_v28 }
 0x191   :  { %v435_v29 = vpop.f32.mrf.mxu3 }
 0x192   :  { %479 = vst [vmem:[#allocation8 + $0x50] sm:$0xff] %v435_v29 }
 0x193   :  { %v390_v30 = vpop.f32.mrf.mxu1 }
 0x194   :  { %464 = vst [vmem:[#allocation7 + $0x58] sm:$0xff] %v390_v30 }
 0x199   :  { %v438_v31 = vpop.f32.mrf.mxu3 }
 0x19a   :  { %480 = vst [vmem:[#allocation8 + $0x58] sm:$0xff] %v438_v31 }
 0x19b   :  { %v393_v32 = vpop.f32.mrf.mxu1 }
 0x19c   :  { %465 = vst [vmem:[#allocation7 + $0x60] sm:$0xff] %v393_v32 }
 0x1a1   :  { %v441_v33 = vpop.f32.mrf.mxu3 }
 0x1a2   :  { %481 = vst [vmem:[#allocation8 + $0x60] sm:$0xff] %v441_v33 }
 0x1a3   :  { %v396_v34 = vpop.f32.mrf.mxu1 }
 0x1a4   :  { %466 = vst [vmem:[#allocation7 + $0x68] sm:$0xff] %v396_v34 }
 0x1a9   :  { %v444_v35 = vpop.f32.mrf.mxu3 }
 0x1aa   :  { %482 = vst [vmem:[#allocation8 + $0x68] sm:$0xff] %v444_v35 }
 0x1ab   :  { %v399_v36 = vpop.f32.mrf.mxu1 }
 0x1ac   :  { %467 = vst [vmem:[#allocation7 + $0x70] sm:$0xff] %v399_v36 }
 0x1b1   :  { %v447_v37 = vpop.f32.mrf.mxu3 }
 0x1b2   :  { %483 = vst [vmem:[#allocation8 + $0x70] sm:$0xff] %v447_v37 }
 0x1b3   :  { %v402_v38 = vpop.f32.mrf.mxu1 }
 0x1b4   :  { %468 = vst [vmem:[#allocation7 + $0x78] sm:$0xff] %v402_v38 }
 0x1b5   :  { %497 = dma.vmem_to_hbm [thread:$0]  %s490_s1, 2048, %s492_s26, [#allocation4], %s828_s22, %s828_s22, %s829_s23  }
 0x1b9   :  { %v450_v39 = vpop.f32.mrf.mxu3 }
 0x1ba   :  { %484 = vst [vmem:[#allocation8 + $0x78] sm:$0xff] %v450_v39 }
 0x1bb   :  { %510 = dma.vmem_to_hbm [thread:$0]  %s503_s28, 2048, %s505_s4, [#allocation9], %s828_s22, %s828_s22, %s829_s23  }
 0x1bc   :  { %822 = dma.done.wait [#allocation4], 2048  }
 0x1bd   :  { %823 = vsyncadd [#allocation4], 4294965248 }
 0x1be   :  { %824 = dma.done.wait [#allocation9], 2048  }
 0x1bf   :  { %825 = vsyncadd [#allocation9], 4294965248 }
 0x1c0   :  { %519 = vsyncpa [#allocation3], 1 }
 0x1c1   :  { %520 = vsyncpa [#allocation6], 1 }
 0x1c2   :  { %521 = vsyncpa [#allocation4], 1 }
 0x1c3   :  { %522 = vsyncpa [#allocation9], 1 }

</bundles_post_ra>
